<compile_context>
chip_gen: v5e
topology: v5e:2x2
jax: 0.10.0
libtpu: 0.0.40
codegen_flags: <defaults>
</compile_context>

<pallas_src>
import math
import jax
import jax.numpy as jnp
from jax.experimental import pallas as pl
from jax.experimental.pallas import tpu as pltpu


def _round_up(n, m):
    return ((n + m - 1) // m) * m


def encoder_kernel(x_ref, w1_ref, b1_ref, w2_ref, b2_ref, v_ref, vs_ref):
    """Fused Encoder forward for one row-tile.

    vs|vf = x @ W1 + b1        (one 2P-wide matmul instead of two P-wide ones)
    v     = (vs|vf) @ W2 + b2  (== vs @ Wf1^T + (vf - vs) @ Wf2^T)
    """
    # TODO(synk): nn.Dropout(p=0.8) is stochastic in train mode; implemented as
    # eval-mode identity here.
    P = vs_ref.shape[-1]
    x = x_ref[...].astype(w1_ref.dtype)                                  # bf16 in
    proj = jnp.dot(x, w1_ref[...],
                   preferred_element_type=jnp.float32) + b1_ref[...]     # (tm, 2P) f32
    v = (jnp.dot(proj.astype(w2_ref.dtype), w2_ref[...],
                 preferred_element_type=jnp.float32) + b2_ref[...])      # (tm, P) f32
    vs_ref[...] = proj[:, :P].astype(vs_ref.dtype)                       # bf16 out
    v_ref[...] = v.astype(v_ref.dtype)                                   # bf16 out


def encoder_forward(video_feats, params, *, frame_size, projected_size,
                    num_frames, row_tile=1024, compute_dtype=jnp.bfloat16,
                    out_dtype=jnp.bfloat16):
    """Mirrors Encoder.forward (eval mode).  Returns (v, vs, vs_)."""
    B, T, feat_dim = video_feats.shape
    F, P = frame_size, projected_size
    N = B * T

    # --- fuse weights: one [feat_dim, 2P] projection and one [2P, P] mixer ---
    w1 = jnp.concatenate([params["vs_w"].T, params["vf_w"].T], axis=1)    # [F, 2P]
    b1 = jnp.concatenate([params["vs_b"], params["vf_b"]]).reshape(1, 2 * P)
    wf = params["f_w"]                                                    # [P, 2P]
    wf1_t, wf2_t = wf[:, :P].T, wf[:, P:].T
    # vs @ Wf1^T + (vf - vs) @ Wf2^T  ==  [vs|vf] @ [[Wf1^T - Wf2^T],[Wf2^T]]
    w2 = jnp.concatenate([wf1_t - wf2_t, wf2_t], axis=0)                  # [2P, P]
    b2 = params["f_b"].reshape(1, P)

    # The [:, :, :F] feature slice is folded into W1 by zero-padding its K dim
    # to feat_dim, so the UN-sliced x is streamed straight from HBM (no slice
    # copy, no host-side pad of x; only a tiny weight pad).
    if F != feat_dim:
        w1 = jnp.pad(w1, ((0, feat_dim - F), (0, 0)))                     # [feat_dim, 2P]
    x = video_feats.reshape(N, feat_dim)                                  # free reshape

    w1 = w1.astype(compute_dtype)
    w2 = w2.astype(compute_dtype)
    b1 = b1.astype(jnp.float32)
    b2 = b2.astype(jnp.float32)

    # --- row-tile selection gated by a generation-aware VMEM budget ----------
    x_bpe = jnp.dtype(video_feats.dtype).itemsize
    w_bpe = jnp.dtype(compute_dtype).itemsize
    o_bpe = jnp.dtype(out_dtype).itemsize

    try:
        vmem_cap = int(pltpu.get_tpu_info().vmem_capacity_bytes)
    except Exception:                                   # pragma: no cover
        vmem_cap = 64 * 1024 * 1024                     # conservative (v7x per-TC)
    vmem_budget = int(0.75 * vmem_cap)                  # headroom for compiler scratch

    # fused weights + biases (count x2 for pipeline buffering)
    weight_bytes = 2 * ((feat_dim * 2 * P + 2 * P * P) * w_bpe + 3 * P * 4)

    def tile_bytes(tm):
        # double-buffered x tile + two double-buffered output tiles
        return 2 * (tm * feat_dim * x_bpe + 2 * tm * P * o_bpe)

    tm = _round_up(min(row_tile, _round_up(N, 8)), 8)
    while tm > 8 and weight_bytes + tile_bytes(tm) > vmem_budget:
        tm = _round_up(tm // 2, 8)
    # TODO(synk): for very large F/P where the resident fused weights alone
    # exceed the VMEM budget (possible on v7x), a K/2P-tiled weight fallback
    # would be needed; not implemented here.

    # Keep at least 2 grid steps so megacore parts (v7x) get both TCs busy.
    if pl.cdiv(N, tm) < 2 and N > 8:
        tm = max(8, _round_up(pl.cdiv(N, 2), 8))

    grid = (pl.cdiv(N, tm),)        # ragged tail: padded reads, masked stores
    full = lambda i: (0, 0)
    row = lambda i: (i, 0)

    est = weight_bytes + tile_bytes(tm)
    vmem_limit = int(min(max(2 * est, 16 * 1024 * 1024), int(0.85 * vmem_cap)))

    v, vs = pl.pallas_call(
        encoder_kernel,
        out_shape=(
            jax.ShapeDtypeStruct((N, P), out_dtype),
            jax.ShapeDtypeStruct((N, P), out_dtype),
        ),
        grid_spec=pltpu.PrefetchScalarGridSpec(
            num_scalar_prefetch=0,
            grid=grid,
            in_specs=[
                pl.BlockSpec((tm, feat_dim), row),      # x rows (un-sliced)
                pl.BlockSpec((feat_dim, 2 * P), full),  # [Wvs^T | Wvf^T] (K-padded, bf16)
                pl.BlockSpec((1, 2 * P), full),         # [bvs | bvf]     (f32)
                pl.BlockSpec((2 * P, P), full),         # stacked frame_embed weight
                pl.BlockSpec((1, P), full),             # bf
            ],
            out_specs=[
                pl.BlockSpec((tm, P), row),             # v  (bf16)
                pl.BlockSpec((tm, P), row),             # vs (bf16)
            ],
        ),
        compiler_params=pltpu.CompilerParams(
            dimension_semantics=("parallel",),
            vmem_limit_bytes=vmem_limit),
    )(x, w1, b1, w2, b2)

    return v.reshape(B, num_frames, P), vs, vs.reshape(B, num_frames, P)


def init_params(key, frame_size, projected_size):
    F, P = frame_size, projected_size
    std = math.sqrt(2.0 / (F + P))                   # matches _init_weights
    k1, k2, k3, k4 = jax.random.split(key, 4)
    bound = 1.0 / math.sqrt(2 * P)                   # default Linear-ish init
    return {
        "vs_w": std * jax.random.normal(k1, (P, F), jnp.float32),
        "vs_b": jnp.zeros((P,), jnp.float32),
        "vf_w": std * jax.random.normal(k2, (P, F), jnp.float32),
        "vf_b": jnp.zeros((P,), jnp.float32),
        "f_w": jax.random.uniform(k3, (P, 2 * P), jnp.float32, -bound, bound),
        "f_b": jax.random.uniform(k4, (P,), jnp.float32, -bound, bound),
    }


def reference_forward(video_feats, params, *, frame_size, projected_size,
                      num_frames):
    B = video_feats.shape[0]
    F, P = frame_size, projected_size
    x = video_feats[:, :, :F].reshape(-1, F)
    vs = x @ params["vs_w"].T + params["vs_b"]
    vf = x @ params["vf_w"].T + params["vf_b"]
    vr = vf - vs
    v = jnp.concatenate([vs, vr], axis=1) @ params["f_w"].T + params["f_b"]
    return v.reshape(B, num_frames, P), vs, vs.reshape(B, num_frames, P)


if __name__ == "__main__":
    # small synthetic config (lane-friendly projection width; feat_dim != F
    # exercises the weight-K-padding path that replaces the slice copy)
    batch = 2
    num_frames = 8
    frame_size = 128
    projected_size = 128
    feat_dim = frame_size + 32        # forward slices [:, :, :frame_size]

    key = jax.random.PRNGKey(0)
    kx, kp = jax.random.split(key)
    video_feats = jax.random.normal(kx, (batch, num_frames, feat_dim),
                                    jnp.float32)
    params = init_params(kp, frame_size, projected_size)

    v, vs, vs_ = encoder_forward(video_feats, params,
                                 frame_size=frame_size,
                                 projected_size=projected_size,
                                 num_frames=num_frames)
    jax.block_until_ready((v, vs, vs_))

    v_ref, vs_ref, vs__ref = reference_forward(
        video_feats, params, frame_size=frame_size,
        projected_size=projected_size, num_frames=num_frames)

    assert v.shape == (batch, num_frames, projected_size)
    assert vs.shape == (batch * num_frames, projected_size)
    assert vs_.shape == (batch, num_frames, projected_size)
    # bf16 weights / activations / outputs with f32 accumulation -> loosened tol
    assert jnp.allclose(v, v_ref, atol=5e-2, rtol=5e-2)
    assert jnp.allclose(vs, vs_ref, atol=5e-2, rtol=5e-2)
    assert jnp.allclose(vs_, vs__ref, atol=5e-2, rtol=5e-2)
    print("KERNEL_OK")
</pallas_src>

<mosaic_0001>
module attributes {stable_mosaic.version = 11 : i64} {
  func.func @encoder_kernel(%arg0: i32, %arg1: memref<8x160xf32, #tpu.memory_space<vmem>>, %arg2: memref<160x256xbf16, #tpu.memory_space<vmem>>, %arg3: memref<1x256xf32, #tpu.memory_space<vmem>>, %arg4: memref<256x128xbf16, #tpu.memory_space<vmem>>, %arg5: memref<1x128xf32, #tpu.memory_space<vmem>>, %arg6: memref<8x128xbf16, #tpu.memory_space<vmem>>, %arg7: memref<8x128xbf16, #tpu.memory_space<vmem>>) attributes {dimension_semantics = [#tpu.dimension_semantics<parallel>], iteration_bounds = array<i64: 2>, scalar_prefetch = 0 : i64, scratch_operands = 0 : i64, tpu.core_type = #tpu.core_type<tc>, window_params = [{transform_indices = @transform_0, window_bounds = array<i64: 8, 160>}, {pipeline_mode = #tpu.pipeline_mode<synchronous>, transform_indices = @transform_1, window_bounds = array<i64: 160, 256>}, {pipeline_mode = #tpu.pipeline_mode<synchronous>, transform_indices = @transform_2, window_bounds = array<i64: 1, 256>}, {pipeline_mode = #tpu.pipeline_mode<synchronous>, transform_indices = @transform_3, window_bounds = array<i64: 256, 128>}, {pipeline_mode = #tpu.pipeline_mode<synchronous>, transform_indices = @transform_4, window_bounds = array<i64: 1, 128>}, {transform_indices = @transform_5, window_bounds = array<i64: 8, 128>}, {transform_indices = @transform_6, window_bounds = array<i64: 8, 128>}]} {
    %c0 = arith.constant 0 : index
    %c0_0 = arith.constant 0 : index
    %0 = vector.load %arg1[%c0, %c0_0] : memref<8x160xf32, #tpu.memory_space<vmem>>, vector<8x160xf32>
    %1 = arith.truncf %0 : vector<8x160xf32> to vector<8x160xbf16>
    %c0_1 = arith.constant 0 : index
    %c0_2 = arith.constant 0 : index
    %2 = vector.load %arg2[%c0_1, %c0_2] : memref<160x256xbf16, #tpu.memory_space<vmem>>, vector<160x256xbf16>
    %cst = arith.constant dense<0.000000e+00> : vector<8x256xf32>
    %3 = tpu.matmul %1, %2, %cst {dimension_numbers = #tpu.dot_dimension_numbers<[1], [0], [0], [1], [0, 0, 1, 1], [], []>} : vector<8x160xbf16>, vector<160x256xbf16>, vector<8x256xf32> -> vector<8x256xf32>
    %c0_3 = arith.constant 0 : index
    %c0_4 = arith.constant 0 : index
    %4 = vector.load %arg3[%c0_3, %c0_4] : memref<1x256xf32, #tpu.memory_space<vmem>>, vector<1x256xf32>
    %5 = vector.broadcast %4 : vector<1x256xf32> to vector<8x256xf32>
    %6 = arith.addf %3, %5 : vector<8x256xf32>
    %7 = arith.truncf %6 : vector<8x256xf32> to vector<8x256xbf16>
    %c0_5 = arith.constant 0 : index
    %c0_6 = arith.constant 0 : index
    %8 = vector.load %arg4[%c0_5, %c0_6] : memref<256x128xbf16, #tpu.memory_space<vmem>>, vector<256x128xbf16>
    %cst_7 = arith.constant dense<0.000000e+00> : vector<8x128xf32>
    %9 = tpu.matmul %7, %8, %cst_7 {dimension_numbers = #tpu.dot_dimension_numbers<[1], [0], [0], [1], [0, 0, 1, 1], [], []>} : vector<8x256xbf16>, vector<256x128xbf16>, vector<8x128xf32> -> vector<8x128xf32>
    %c0_8 = arith.constant 0 : index
    %c0_9 = arith.constant 0 : index
    %10 = vector.load %arg5[%c0_8, %c0_9] : memref<1x128xf32, #tpu.memory_space<vmem>>, vector<1x128xf32>
    %11 = vector.broadcast %10 : vector<1x128xf32> to vector<8x128xf32>
    %12 = arith.addf %9, %11 : vector<8x128xf32>
    %13 = vector.extract_strided_slice %6 {offsets = [0, 0], sizes = [8, 128], strides = [1, 1]} : vector<8x256xf32> to vector<8x128xf32>
    %14 = arith.truncf %13 : vector<8x128xf32> to vector<8x128xbf16>
    %c0_10 = arith.constant 0 : index
    %c0_11 = arith.constant 0 : index
    %15 = vector.load %arg7[%c0_10, %c0_11] : memref<8x128xbf16, #tpu.memory_space<vmem>>, vector<8x128xbf16>
    tpu.vector_store %arg7[%c0_10, %c0_11], %14 {strides = array<i32>} : memref<8x128xbf16, #tpu.memory_space<vmem>>, vector<8x128xbf16>,
    %16 = arith.truncf %12 : vector<8x128xf32> to vector<8x128xbf16>
    %c0_12 = arith.constant 0 : index
    %c0_13 = arith.constant 0 : index
    %17 = vector.load %arg6[%c0_12, %c0_13] : memref<8x128xbf16, #tpu.memory_space<vmem>>, vector<8x128xbf16>
    tpu.vector_store %arg6[%c0_12, %c0_13], %16 {strides = array<i32>} : memref<8x128xbf16, #tpu.memory_space<vmem>>, vector<8x128xbf16>,
    return
  }
  func.func @transform_0(%arg0: i32) -> (i32, i32) {
    %c0_i32 = arith.constant 0 : i32
    %c0_i32_0 = arith.constant 0 : i32
    return %arg0, %c0_i32 : i32, i32
  }
  func.func @transform_1(%arg0: i32) -> (i32, i32) {
    %c0_i32 = arith.constant 0 : i32
    %c0_i32_0 = arith.constant 0 : i32
    %c0_i32_1 = arith.constant 0 : i32
    return %c0_i32, %c0_i32_0 : i32, i32
  }
  func.func @transform_2(%arg0: i32) -> (i32, i32) {
    %c0_i32 = arith.constant 0 : i32
    %c0_i32_0 = arith.constant 0 : i32
    %c0_i32_1 = arith.constant 0 : i32
    return %c0_i32, %c0_i32_0 : i32, i32
  }
  func.func @transform_3(%arg0: i32) -> (i32, i32) {
    %c0_i32 = arith.constant 0 : i32
    %c0_i32_0 = arith.constant 0 : i32
    %c0_i32_1 = arith.constant 0 : i32
    return %c0_i32, %c0_i32_0 : i32, i32
  }
  func.func @transform_4(%arg0: i32) -> (i32, i32) {
    %c0_i32 = arith.constant 0 : i32
    %c0_i32_0 = arith.constant 0 : i32
    %c0_i32_1 = arith.constant 0 : i32
    return %c0_i32, %c0_i32_0 : i32, i32
  }
  func.func @transform_5(%arg0: i32) -> (i32, i32) {
    %c0_i32 = arith.constant 0 : i32
    %c0_i32_0 = arith.constant 0 : i32
    return %arg0, %c0_i32 : i32, i32
  }
  func.func @transform_6(%arg0: i32) -> (i32, i32) {
    %c0_i32 = arith.constant 0 : i32
    %c0_i32_0 = arith.constant 0 : i32
    return %arg0, %c0_i32 : i32, i32
  }
}

</mosaic_0001>

<bundles_post_ra>
// kernel: tpu_custom_call.1
= control target key start
LH: loop header
LB: loop body
LE: loop exit
PB: predicated region body
PF: predicated region fallthrough
CT: control target
= control target key end

     0   :  { %12 = vsyncpa [#allocation3], 0  ;;  %s1592_s0 = inlined_call_operand.hbm [shape: f32[16,160], index: 0, kind: input, shape index: {}]   ;;  %s1593_s1 = inlined_call_operand.hbm [shape: bf16[160,256], index: 1, kind: input, shape index: {}]   ;;  %s1594_s2 = inlined_call_operand.hbm [shape: f32[1,256], index: 2, kind: input, shape index: {}]   ;;  %s1595_s3 = inlined_call_operand.hbm [shape: bf16[256,128], index: 3, kind: input, shape index: {}]   ;;  %s1596_s4 = inlined_call_operand.vmem [shape: f32[1,128], index: 4, kind: input, shape index: {}]   ;;  %s1597_s5 = inlined_call_operand.hbm [shape: bf16[16,128], index: 5, kind: output, shape index: {0}]   ;;  %s1598_s6 = inlined_call_operand.hbm [shape: bf16[16,128], index: 6, kind: output, shape index: {1}]  }
   0x1   :  { %14 = vsyncpa [#allocation3 + $0x1], 0 }
   0x2   :  { %15 = vsyncpa [#allocation6], 0 }
   0x3   :  { %16 = vsyncpa [#allocation9], 0 }
   0x4   :  { %17 = vsyncpa [#allocation4], 0 }
   0x5   :  { %19 = vsyncpa [#allocation4 + $0x1], 0 }
   0x6   :  { %20 = vsyncpa [#allocation12], 0 }
   0x7   :  { %22 = vsyncpa [#allocation12 + $0x1], 0  ;;  %s1408_s21 = smov 0   ;;  %s1410_s22 = smov 0  }
   0x8   :  { %s1412_s23 = smov 0   ;;  %s1414_s24 = smov 0  }
   0x9 LB: > { %s206_s27 = sshll.u32 %s1593_s1, 4  ;;  %s1432_s28 = sadd.s32 4294967295, %s1364_s24   ;;  %s1364_s24 = sphi %s1414_s24, %s1611_s24   ;;  %s1360_s23 = sphi %s1412_s23, %s1610_s23   ;;  %s1356_s22 = sphi %s1410_s22, %s1609_s22   ;;  %s1352_s21 = sphi %s1408_s21, %s1608_s21   ;;  %s207_s27 = int_to_ptr.hbm [resolvable:$true] %s206_s27 }
   0xa   : > { %p847_p0 = scmp.ge.s32.totalorder %s1364_s24, 1  ;;  %p49_p1 = scmp.eq.s32.totalorder %s1432_s28, 0 }
   0xb   : > { %p195_p2 = scmp.lt.s32.totalorder %s1364_s24, 3  ;;  %s1366_s30 = smov [#allocation5]  }
   0xc   : > { %s208_s7 = sshll.u32 %s1366_s30, 4  ;;  %s221_s10 = sshll.u32 %s1594_s2, 4  ;;  %s209_s7 = int_to_ptr.vmem [resolvable:$true] %s208_s7  ;;  %s222_s10 = int_to_ptr.hbm [resolvable:$true] %s221_s10 }
   0xd   : > { %p1437_p3 = pnand %p847_p0, %p195_p2  ;;  %s232_s14 = sshll.u32 %s1595_s3, 4  ;;  %s233_s14 = int_to_ptr.hbm [resolvable:$true] %s232_s14 }
   0xe   : > { %s1367_s15 = smov [#allocation7]   ;;  %s1368_s17 = smov 128  }
   0xf   : > { %p1069_p4 = pneg %p1437_p3  ;;  %s223_s16 = sshll.u32 %s1367_s15, 4  ;;  %s224_s16 = int_to_ptr.vmem [resolvable:$true] %s223_s16 }
  0x10   : > { %s1369_s18 = smov 8   ;;  %s1370_s19 = smov [#allocation8]  }
  0x11   : > { %p1449_p6 = pnand %p1069_p4, %p49_p1  ;;  %s234_s20 = sshll.u32 %s1370_s19, 4  ;;  %s235_s20 = int_to_ptr.vmem [resolvable:$true] %s234_s20 }
  0x12   : > { %s1371_s25 = smov 64   ;;  %s1372_s26 = smov 4  }
  0x13   : > { %1072 = dma.hbm_to_vmem [thread:$0]  (!%p1449_p6), %s207_s27, 2560, %s209_s7, [#allocation6], %s1368_s17, %s1368_s17, %s1369_s18  }
  0x14   : > { %1075 = dma.hbm_to_vmem [thread:$0]  (!%p1449_p6), %s222_s10, 32, %s224_s16, [#allocation6]  }
  0x15   : > { %1078 = dma.hbm_to_vmem [thread:$0]  (!%p1449_p6), %s233_s14, 2048, %s235_s20, [#allocation9], %s1371_s25, %s1371_s25, %s1372_s26  }
  0x16   : > { %s846_s30 = sadd.s32 4294967294, %s1364_s24   ;;  %s1464_s27 = sadd.s32 1, %s1364_s24  }
  0x17   : > { %s35_s7 = sadd.s32 1, %s1360_s23  ;;  %s32_s8 = ssub.s32 %s1364_s24, %s1464_s27 }
  0x18   : > { %p42_p7 = scmp.ne.s32.totalorder %s1360_s23, %s1356_s22  ;;  %p33_p8 = scmp.eq.s32.totalorder %s32_s8, 0 }
  0x19   : > { %p43_p9 = scmp.eq.s32.totalorder %s1364_s24, 0  ;;  %p48_p10 = scmp.ne.s32.totalorder %s1356_s22, %s1352_s21 }
  0x1a   : > { %p156_p11 = scmp.eq.s32.totalorder %s1432_s28, 1  ;;  %p162_p0 = scmp.eq.s32.totalorder %s846_s30, 1 }
  0x1b   : > { %s1476_s9 = scalar_select %p33_p8, %s1360_s23, %s35_s7  }
  0x1c   : > { %p1480_p12 = por %p49_p1, %p48_p10  ;;  %p1484_p13 = por %p156_p11, %p42_p7 }
  0x1d   : > { %p44_p2 = por %p43_p9, %p42_p7  ;;  %s251_s12 = sand.u32 1, %s1360_s23  }
  0x1e   : > { %p1489_p4 = por %p162_p0, %p48_p10  ;;  %p1093_p6 = scmp.lt.s32.totalorder %s1364_s24, 2 }
  0x1f   : > { %s852_s14 = sshll.u32 %s251_s12, 4  ;;  %s1014_s15 = sshll.u32 %s1364_s24, 4 }
  0x20   : > { %s260_s18 = scalar_lea.hbm %s1592_s0, %s1014_s15  ;;  %s255_s20 = scalar_lea.vmem [#allocation2], %s852_s14 }
  0x21   : > { %s262_s19 = sshll.u32 %s260_s18, 4  ;;  %s264_s25 = sshll.u32 %s255_s20, 4  ;;  %s263_s19 = int_to_ptr.hbm [resolvable:$true] %s262_s19  ;;  %s265_s25 = int_to_ptr.vmem [resolvable:$true] %s264_s25 }
  0x22   : > { %p1498_p8 = pnand %p1093_p6, %p44_p2  ;;  %s252_s30 = scalar_lea.sflag [#allocation3], %s251_s12 }
  0x23   : > { %s1228_s7 = sshra.s32 %s263_s19, 4  ;;  %s1235_s14 = scalar_lea.hbm %s1592_s0, 32  ;;  %s1229_s7 = int_to_ptr.hbm [resolvable:$true] %s1228_s7 }
  0x24   : > { %s1230_s8 = scalar_lea.hbm %s1229_s7, 16  ;;  %p1232_p9 = pneg %p1498_p8 }
  0x25   : > { %p1231_p7 = scmp.ne.s32.totalorder %s1229_s7, %s1230_s8  ;;  %p1236_p0 = scmp.lt.s32.totalorder %s1229_s7, %s1592_s0 }
  0x26   : > { %p1237_p2 = scmp.lt.s32.totalorder %s1235_s14, %s1230_s8 }
  0x27   : > { %p1233_p10 = pnand %p1232_p9, %p1231_p7 }
  0x28   : > { %p1238_p6 = por %p1237_p2, %p1236_p0 }
  0x29   : > { %p1234_p11 = pneg %p1233_p10 }
  0x2b   : > { %p1239_p5 = pnand %p1238_p6, %p1234_p11 }
  0x2d   : > { %1242 = shalt.err (!%p1239_p5)
}
  0x2e   : > { %1082 = dma.hbm_to_vmem [thread:$0]  (!%p1498_p8), %s263_s19, 256, %s265_s25, %s252_s30  }
  0x2f   : > { %273 = sbr.rel (%p1437_p3) target bundleno = 369 (0x171), region = 40  ;;  %s1515_s12 = sand.u32 (!%p1437_p3), 1, %s1356_s22  }
  0x30   : > { %s856_s20 = sshll.u32 (!%p1437_p3), %s1515_s12, 4  ;;  %s276_s15 = scalar_lea.sflag (!%p1437_p3), [#allocation3], %s1515_s12 }
  0x31   : > { %s1519_s16 = scalar_lea.vmem (!%p1437_p3), [#allocation2], %s856_s20 }
  0x34   : > { %1331 = dma.done.wait (%p1480_p12), %s276_s15, 256  }
  0x35   : > { %1333 = vsyncadd (%p1480_p12), %s276_s15, 4294967040 }
  0x36   : > { %1335 = dma.done.wait (%p49_p1), [#allocation6], 2592  }
  0x37   : > { %1337 = vsyncadd (%p49_p1), [#allocation6], 4294964704 }
  0x38   : > { %1339 = dma.done.wait (%p49_p1), [#allocation9], 2048  }
  0x39   : > { %1341 = vsyncadd (%p49_p1), [#allocation9], 4294965248  ;;  %v1029_v0 = vld [vmem:[#allocation5 + $0x74] sm:$0xf]  ;;  %v922_v1 = vld [vmem:[#allocation5 + $0x78] sm:$0xf0] }
  0x3a   : > { %v920_v2 = vld [vmem:[#allocation5 + $0x70] sm:$0xf]  ;;  %v925_v3 = vor.u32 %v1029_v0, %v922_v1  ;;  %v1030_v4 = vld [vmem:[#allocation5 + $0x74] sm:$0xf0]  ;;  %v1027_v5 = vld [vmem:[#allocation5 + $0x64] sm:$0xf] }
  0x3b   : > { %v914_v6 = vld [vmem:[#allocation5 + $0x68] sm:$0xf0]  ;;  %v921_v7 = vor.u32 %v1030_v4, %v920_v2  ;;  %v912_v8 = vld [vmem:[#allocation5 + $0x60] sm:$0xf]  ;;  %v1028_v9 = vld [vmem:[#allocation5 + $0x64] sm:$0xf0] }
  0x3c   : > { %490 = vmatpush.bf16.msra.mxu2 %v925_v3  ;;  %v917_v10 = vor.u32 %v1027_v5, %v914_v6  ;;  %v913_v11 = vor.u32 %v1028_v9, %v912_v8  ;;  %v1025_v12 = vld [vmem:[#allocation5 + $0x54] sm:$0xf]  ;;  %v906_v13 = vld [vmem:[#allocation5 + $0x58] sm:$0xf0]  ;;  %v904_v14 = vld [vmem:[#allocation5 + $0x50] sm:$0xf] }
  0x3d   : > { %464 = vmatpush.bf16.msra.mxu0 %v921_v7  ;;  %v1026_v15 = vld [vmem:[#allocation5 + $0x54] sm:$0xf0]  ;;  %v1033_v16 = vld [vmem:[#allocation5 + $0x94] sm:$0xf]  ;;  %v938_v17 = vld [vmem:[#allocation5 + $0x98] sm:$0xf0]  ;;  %v909_v18 = vor.u32 %v1025_v12, %v906_v13 }
  0x3e   : > { %v1023_v19 = vld [vmem:[#allocation5 + $0x44] sm:$0xf]  ;;  %v941_v20 = vor.u32 %v1033_v16, %v938_v17  ;;  %v905_v21 = vor.u32 %v1026_v15, %v904_v14  ;;  %v898_v22 = vld [vmem:[#allocation5 + $0x48] sm:$0xf0]  ;;  %v896_v25 = vld [vmem:[#allocation5 + $0x40] sm:$0xf] }
  0x3f   : > { %v1031_v23 = vld [vmem:[#allocation5 + $0x84] sm:$0xf]  ;;  %v930_v24 = vld [vmem:[#allocation5 + $0x88] sm:$0xf0]  ;;  %v1024_v26 = vld [vmem:[#allocation5 + $0x44] sm:$0xf0]  ;;  %v901_v29 = vor.u32 %v1023_v19, %v898_v22 }
  0x40   : > { %491 = vmatpush.bf16.msra.mxu2 %v917_v10  ;;  %509 = vmatpush.bf16.msra.mxu3 %v941_v20  ;;  %v933_v27 = vor.u32 %v1031_v23, %v930_v24  ;;  %v331_v28 = vld [vmem:[%s1519_s16 + $0x8] sm:$0xff]  ;;  %v1021_v30 = vld [vmem:[#allocation5 + $0x34] sm:$0xf]  ;;  %vm460_vm0 = vcmask 261120   ;;  %v936_v31 = vld [vmem:[#allocation5 + $0x90] sm:$0xf]  ;;  %v897_v32 = vor.u32 %v1024_v26, %v896_v25 }
  0x41   : > { %465 = vmatpush.bf16.msra.mxu0 %v913_v11  ;;  %v890_v33 = vld [vmem:[#allocation5 + $0x38] sm:$0xf0]  ;;  %v888_v34 = vld [vmem:[#allocation5 + $0x30] sm:$0xf]  ;;  %v333_v35 = vpack.c.bf16 %v331_v28, %v331_v28  ;;  %v1034_v36 = vld [vmem:[#allocation5 + $0x94] sm:$0xf0] }
  0x42   : > { %v1022_v37 = vld [vmem:[#allocation5 + $0x34] sm:$0xf0]  ;;  %v937_v38 = vor.u32 %v1034_v36, %v936_v31  ;;  %v928_v39 = vld [vmem:[#allocation5 + $0x80] sm:$0xf]  ;;  %v1032_v40 = vld [vmem:[#allocation5 + $0x84] sm:$0xf0]  ;;  %v893_v42 = vor.u32 %v1021_v30, %v890_v33 }
  0x43   : > { %v1050_v41 = vld [vmem:[#allocation8 + $0x78] sm:$0xff]  ;;  %v1019_v43 = vld [vmem:[#allocation5 + $0x24] sm:$0xf]  ;;  %v929_v44 = vor.u32 %v1032_v40, %v928_v39  ;;  %v889_v45 = vor.u32 %v1022_v37, %v888_v34  ;;  %v882_v46 = vld [vmem:[#allocation5 + $0x28] sm:$0xf0]  ;;  %s1599_s29 = sshll.u32 %s1515_s12, 2 }
  0x44   : > { %492 = vmatpush.bf16.msra.mxu2 %v909_v18  ;;  %510 = vmatpush.bf16.msra.mxu3 %v933_v27  ;;  %v880_v47 = vld [vmem:[#allocation5 + $0x20] sm:$0xf]  ;;  %v1020_v49 = vld [vmem:[#allocation5 + $0x24] sm:$0xf0]  ;;  %v1049_v50 = vld [vmem:[#allocation8 + $0x70] sm:$0xff]  ;;  %v885_v51 = vor.u32 %v1019_v43, %v882_v46  ;;  %s328_s10 = scalar_lea.vmem [#allocation11], %s1599_s29 }
  0x45   : > { %466 = vmatpush.bf16.msra.mxu0 %v905_v21  ;;  %483 = vmatpush.bf16.msra.mxu1 %v937_v38  ;;  %v1042_v48 = vld [vmem:[#allocation8 + $0x38] sm:$0xff]  ;;  %v881_v52 = vor.u32 %v1020_v49, %v880_v47  ;;  %v1017_v53 = vld [vmem:[#allocation5 + $0x14] sm:$0xf]  ;;  %v872_v56 = vld [vmem:[#allocation5 + $0x10] sm:$0xf]  ;;  %s1010_s19 = sshll.u32 %s1432_s28, 2 }
  0x46   : > { %v874_v54 = vld [vmem:[#allocation5 + $0x18] sm:$0xf0]  ;;  %v1041_v55 = vld [vmem:[#allocation8 + $0x30] sm:$0xff]  ;;  %v1048_v58 = vld [vmem:[#allocation8 + $0x68] sm:$0xff]  ;;  %s709_s30 = scalar_lea.hbm %s1598_s6, %s1010_s19  ;;  %s711_s7 = sshll.u32 %s328_s10, 4  ;;  %s712_s7 = int_to_ptr.vmem [resolvable:$true] %s711_s7 }
  0x47   : > { %943 = vmatmul.msk.bf16.vlgmr.msra.gmra.mxu3 %vm460_vm0, %v333_v35  ;;  %v1018_v57 = vld [vmem:[#allocation5 + $0x14] sm:$0xf0]  ;;  %v877_v59 = vor.u32 %v1017_v53, %v874_v54  ;;  %v1015_v61 = vld [vmem:[#allocation5 + $0x4] sm:$0xf]  ;;  %v866_v62 = vld [vmem:[#allocation5 + $0x8] sm:$0xf0] }
  0x48   : > { %493 = vmatpush.bf16.msra.mxu2 %v901_v29  ;;  %663 = vmatpush.bf16.msrb.mxu3 %v1050_v41  ;;  %v873_v60 = vor.u32 %v1018_v57, %v872_v56  ;;  %v1040_v63 = vld [vmem:[#allocation8 + $0x28] sm:$0xff]  ;;  %v864_v0 = vld [vmem:[#allocation5] sm:$0xf]  ;;  %v869_v3 = vor.u32 %v1015_v61, %v866_v62  ;;  %v1037_v10 = vld [vmem:[#allocation8 + $0x10] sm:$0xff]  ;;  %s713_s8 = sshll.u32 %s709_s30, 4  ;;  %s685_s14 = scalar_lea.sflag [#allocation12], %s1515_s12  ;;  %s714_s8 = int_to_ptr.hbm [resolvable:$true] %s713_s8 }
  0x49   : > { %467 = vmatpush.bf16.msra.mxu0 %v897_v32  ;;  %484 = vmatpush.bf16.msra.mxu1 %v929_v44  ;;  %v1016_v1 = vld [vmem:[#allocation5 + $0x4] sm:$0xf0]  ;;  %v330_v4 = vld [vmem:[%s1519_s16] sm:$0xff]  ;;  %s1272_s17 = sshra.s32 %s714_s8, 4  ;;  %s1278_s28 = scalar_lea.hbm %s1598_s6, 8  ;;  %s1273_s17 = int_to_ptr.hbm [resolvable:$true] %s1272_s17 }
  0x4a   : > { %v1047_v2 = vld [vmem:[#allocation8 + $0x60] sm:$0xff]  ;;  %v865_v5 = vor.u32 %v1016_v1, %v864_v0  ;;  %v1046_v7 = vld [vmem:[#allocation8 + $0x58] sm:$0xff]  ;;  %v332_v8 = vpack.c.bf16 %v330_v4, %v330_v4  ;;  %v1045_v11 = vld [vmem:[#allocation8 + $0x50] sm:$0xff]  ;;  %s1274_s18 = scalar_lea.hbm %s1273_s17, 4  ;;  %p1279_p12 = scmp.lt.s32.totalorder %s1273_s17, %s1598_s6 }
  0x4b   : > { %v1039_v6 = vld [vmem:[#allocation8 + $0x20] sm:$0xff]  ;;  %v1038_v9 = vld [vmem:[#allocation8 + $0x18] sm:$0xff]  ;;  %v1036_v12 = vld [vmem:[#allocation8 + $0x8] sm:$0xff]  ;;  %p1275_p1 = scmp.ne.s32.totalorder %s1273_s17, %s1274_s18  ;;  %p1280_p8 = scmp.lt.s32.totalorder %s1278_s28, %s1274_s18 }
  0x4c   : > { %494 = vmatpush.bf16.msra.mxu2 %v893_v42  ;;  %664 = vmatpush.bf16.msrb.mxu3 %v1049_v50  ;;  %v1044_v13 = vld [vmem:[#allocation8 + $0x48] sm:$0xff]  ;;  %v1035_v14 = vld [vmem:[#allocation8] sm:$0xff]  ;;  %v354_v18 = vld [vmem:[#allocation7] sm:$0x3] }
  0x4d   : > { %468 = vmatpush.bf16.msra.mxu0 %v889_v45  ;;  %650 = vmatpush.bf16.msrb.mxu1 %v1042_v48  ;;  %v1043_v15 = vld [vmem:[#allocation8 + $0x40] sm:$0xff]  ;;  %v356_v21 = vperm.slane %v354_v18, 0  ;;  %v357_v24 = vperm.slane %v354_v18, 1  ;;  %p1276_p3 = pnand %p1275_p1, %p1484_p13  ;;  %p1281_p7 = por %p1280_p8, %p1279_p12 }
  0x4e   : > { %942 = vmatmul.msk.bf16.vlgmr.msra.gmra.mxu1 %vm460_vm0, %v333_v35 }
  0x4f   : > { %p1277_p5 = pneg %p1276_p3 }
  0x50   : > { %495 = vmatpush.bf16.msra.mxu2 %v885_v51  ;;  %665 = vmatpush.bf16.msrb.mxu3 %v1048_v58 }
  0x51   : > { %469 = vmatpush.bf16.msra.mxu0 %v881_v52  ;;  %651 = vmatpush.bf16.msrb.mxu1 %v1041_v55  ;;  %p1282_p9 = pnand %p1281_p7, %p1277_p5 }
  0x54   : > { %496 = vmatpush.bf16.msra.mxu2 %v877_v59  ;;  %666 = vmatpush.bf16.msrb.mxu3 %v1047_v2 }
  0x55   : > { %470 = vmatpush.bf16.msra.mxu0 %v873_v60  ;;  %652 = vmatpush.bf16.msrb.mxu1 %v1040_v63 }
  0x58   : > { %497 = vmatpush.bf16.msra.mxu2 %v869_v3  ;;  %667 = vmatpush.bf16.msrb.mxu3 %v1046_v7 }
  0x59   : > { %471 = vmatpush.bf16.msra.mxu0 %v865_v5  ;;  %653 = vmatpush.bf16.msrb.mxu1 %v1039_v6 }
  0x5b   : > { %498 = vmatmul.bf16.vlgmr.msra.gmra.mxu2 %v332_v8 }
  0x5c   : > { %472 = vmatmul.bf16.vlgmr.msra.gmra.mxu0 %v332_v8  ;;  %668 = vmatpush.bf16.msrb.mxu3 %v1045_v11 }
  0x5d   : > { %654 = vmatpush.bf16.msrb.mxu1 %v1038_v9 }
  0x60   : > { %669 = vmatpush.bf16.msrb.mxu3 %v1044_v13 }
  0x61   : > { %655 = vmatpush.bf16.msrb.mxu1 %v1037_v10 }
  0x64   : > { %670 = vmatpush.bf16.msrb.mxu3 %v1043_v15 }
  0x65   : > { %656 = vmatpush.bf16.msrb.mxu1 %v1036_v12 }
  0x69   : > { %657 = vmatpush.bf16.msrb.mxu1 %v1035_v14 }
  0xca   : > { %v512_v16 = vpop.f32.mrf.mxu3 }
  0xcb   : > { %v486_v17 = vpop.f32.mrf.mxu1 }
  0xd2   : > { %v514_v19 = vpop.f32.mrf.mxu3 }
  0xd3   : > { %v488_v20 = vpop.f32.mrf.mxu1 }
  0xd9   : > { %v473_v22 = vpop.f32.mrf.mxu0 }
  0xda   : > { %v474_v23 = vadd.f32 %v473_v22, %v356_v21 }
  0xdc   : > { %v487_v25 = vadd.f32 %v486_v17, %v474_v23 }
  0xde   : > { %v516_v26 = vpack.c.bf16 %v487_v25, %v487_v25  ;;  %v499_v27 = vpop.f32.mrf.mxu2 }
  0xdf   : > { %v500_v28 = vadd.f32 %v499_v27, %v357_v24 }
  0xe0   : > { %676 = vst [vmem:[%s328_s10] sm:$0xf] %v516_v26  ;;  %658 = vmatmul.bf16.vlgmr.msrb.gmra.mxu1 %v516_v26 }
  0xe1   : > { %v513_v29 = vadd.f32 %v512_v16, %v500_v28  ;;  %v475_v30 = vpop.f32.mrf.mxu0 }
  0xe3   : > { %v517_v31 = vpack.c.bf16 %v513_v29, %v513_v29 }
  0xe5   : > { %671 = vmatmul.bf16.vlgmr.msrb.gmra.mxu3 %v517_v31 }
  0xe6   : > { %v501_v32 = vpop.f32.mrf.mxu2 }
  0xe7   : > { %1285 = shalt.err (!%p1282_p9)
}
  0xe8   : > { %1066 = dma.vmem_to_hbm [thread:$0]  (%p1484_p13), %s712_s7, 64, %s714_s8, %s685_s14   ;;  %v1137_v34 = vld [vmem:[%s1596_s4] ss:$0 sm:$0xff] }
  0xe9   : > { %s695_s29 = scalar_lea.hbm %s1597_s5, %s1010_s19  ;;  %s1606_s17 = sshll.u32 %s1515_s12, 2 }
  0xea   : > { %s321_s18 = scalar_lea.vmem [#allocation10], %s1606_s17  ;;  %s699_s15 = sshll.u32 %s695_s29, 4  ;;  %s700_s15 = int_to_ptr.hbm [resolvable:$true] %s699_s15 }
  0xeb   : > { %s697_s20 = sshll.u32 %s321_s18, 4  ;;  %s680_s7 = scalar_lea.sflag [#allocation4], %s1515_s12  ;;  %s698_s20 = int_to_ptr.vmem [resolvable:$true] %s697_s20 }
  0xec   : > { %s1300_s8 = sshra.s32 %s700_s15, 4  ;;  %s1306_s16 = scalar_lea.hbm %s1597_s5, 8  ;;  %s1301_s8 = int_to_ptr.hbm [resolvable:$true] %s1300_s8 }
  0xed   : > { %s1302_s14 = scalar_lea.hbm %s1301_s8, 4  ;;  %p1307_p2 = scmp.lt.s32.totalorder %s1301_s8, %s1597_s5 }
  0xee   : > { %p1303_p10 = scmp.ne.s32.totalorder %s1301_s8, %s1302_s14  ;;  %p1308_p6 = scmp.lt.s32.totalorder %s1306_s16, %s1302_s14 }
  0xf0   : > { %p1304_p11 = pnand %p1303_p10, %p1484_p13  ;;  %p1309_p1 = por %p1308_p6, %p1307_p2 }
  0xf2   : > { %p1305_p0 = pneg %p1304_p11 }
  0xf4   : > { %p1310_p3 = pnand %p1309_p1, %p1305_p0 }
 0x15d   : > { %v659_v33 = vpop.f32.mrf.mxu1 }
 0x15e   : > { %v660_v35 = vadd.f32 %v1137_v34, %v659_v33 }
 0x165   : > { %v661_v36 = vpop.f32.mrf.mxu1 }
 0x168   : > { %v672_v37 = vpop.f32.mrf.mxu3 }
 0x169   : > { %v673_v38 = vadd.f32 %v672_v37, %v660_v35 }
 0x16b   : > { %v677_v39 = vpack.c.bf16 %v673_v38, %v673_v38 }
 0x16d   : > { %678 = vst [vmem:[%s321_s18] sm:$0xf] %v677_v39 }
 0x16e   : > { %1313 = shalt.err (!%p1310_p3)
}
 0x16f   : > { %1065 = dma.vmem_to_hbm [thread:$0]  (%p1484_p13), %s698_s20, 64, %s700_s15, %s680_s7  }
 0x170   : > { %v674_v40 = vpop.f32.mrf.mxu3 }
 0x171 PF: > { %s725_s12 = sand.u32 1, %s1352_s21   ;;  %p1607_p5 = scmp.ge.s32.totalorder %s1364_s24, 2 }
 0x172   : > { %s726_s26 = scalar_lea.sflag [#allocation4], %s725_s12 }
 0x173   : > { %p1084_p12 = pnand %p1607_p5, %p1489_p4 }
 0x175   : > { %p1085_p8 = pneg %p1084_p12 }
 0x177   : > { %1343 = dma.done.wait (%p1085_p8), %s726_s26, 64  }
 0x178   : > { %1345 = vsyncadd (%p1085_p8), %s726_s26, 4294967232  ;;  %s736_s30 = scalar_lea.sflag [#allocation12], %s725_s12 }
 0x179   : > { %1347 = dma.done.wait (%p1085_p8), %s736_s30, 64  }
 0x17a   : > { %1349 = vsyncadd (%p1085_p8), %s736_s30, 4294967232  ;;  %p25_p13 = scmp.ge.s32.totalorder %s1464_s27, 4   ;;  %s1608_s21 = smov %s1356_s22 }
 0x17b   : > { %s1609_s22 = smov %s1360_s23  ;;  %s1610_s23 = smov %s1476_s9 }
 0x17c   : > { %s1611_s24 = smov %s1464_s27  ;;  %27 = sbr.rel (!%p25_p13) target bundleno = 9 (0x9), region = 114 }
 0x181   :  { %742 = vsyncpa [#allocation3], 1 }
 0x182   :  { %744 = vsyncpa [#allocation3 + $0x1], 1 }
 0x183   :  { %745 = vsyncpa [#allocation6], 1 }
 0x184   :  { %746 = vsyncpa [#allocation9], 1 }
 0x185   :  { %747 = vsyncpa [#allocation4], 1 }
 0x186   :  { %749 = vsyncpa [#allocation4 + $0x1], 1 }
 0x187   :  { %750 = vsyncpa [#allocation12], 1 }
 0x188   :  { %752 = vsyncpa [#allocation12 + $0x1], 1 }

</bundles_post_ra>
